<compile_context>
chip_gen: v7x
topology: tpu7x:2x2x1
jax: 0.10.0
libtpu: 0.0.40
codegen_flags: <defaults>
</compile_context>

<pallas_src>
import functools

import jax
import jax.numpy as jnp
from jax import lax
from jax.experimental import pallas as pl
from jax.experimental.pallas import tpu as pltpu

LN_EPS = 1e-5  # PyTorch nn.LayerNorm default


def _conv_ln_kernel(p_ref, w_ref, g_ref, b_ref, o_ref, *, inv_channels):
    # p_ref: (TILE_M, K)   im2col patch slab, K = 9*C
    # w_ref: (K, Cop)      tap-major conv weights, zero-padded to Cop lanes
    # g_ref: (1, Cop)      LayerNorm gamma (zero-padded)
    # b_ref: (1, Cop)      LayerNorm beta  (zero-padded)
    # o_ref: (TILE_M, Cop) flat, lane-dense output tile
    acc = jnp.dot(p_ref[...], w_ref[...],
                  preferred_element_type=jnp.float32)          # (TILE_M, Cop) f32

    # LayerNorm over channels, single-pass stats. Padded lanes are exactly 0
    # (zero weight columns), so full-lane sums equal sums over the real Co
    # channels; divide by the true channel count.
    s = jnp.sum(acc, axis=-1, keepdims=True)
    ss = jnp.sum(acc * acc, axis=-1, keepdims=True)
    mean = s * inv_channels
    var = ss * inv_channels - mean * mean
    y = (acc - mean) * lax.rsqrt(var + LN_EPS)
    y = y * g_ref[...].astype(jnp.float32) + b_ref[...].astype(jnp.float32)
    o_ref[...] = y.astype(o_ref.dtype)


def conv_downsampler(x, w, gamma, beta, *, tile_m=512, compute_dtype=None):
    """x: (B, H, W, C) NHWC; w: (2C, C, 3, 3) PyTorch OIHW; gamma/beta: (2C,).

    compute_dtype: dtype of the matmul operands (default x.dtype). Pass
    jnp.bfloat16 on v6e/v7x for MXU throughput; accumulation stays f32.
    """
    B, H, W, C = x.shape
    Co = w.shape[0]
    assert w.shape == (2 * C, C, 3, 3) and H % 2 == 0 and W % 2 == 0
    Ho, Wo = H // 2, W // 2
    M = Ho * Wo
    K = 9 * C
    cdt = compute_dtype or x.dtype
    # lane-dense output channel count (multiple of 128), sliced off after the call
    Cop = ((Co + 127) // 128) * 128

    # --- glue: padding + stride-2 im2col (pure layout, no arithmetic) ---------
    # patches[b, i*Wo + j, (kh*3+kw)*C + c] = x_pad[b, 2i+kh, 2j+kw, c]
    xpad = jnp.pad(x, ((0, 0), (1, 1), (1, 1), (0, 0)))
    taps = [xpad[:, kh:kh + 2 * Ho:2, kw:kw + 2 * Wo:2, :]
            for kh in range(3) for kw in range(3)]
    patches = jnp.concatenate(taps, axis=-1).reshape(B, M, K).astype(cdt)

    # conv weight (Co, C, kh, kw) -> (K = 9C, Cop), tap-major rows, zero-padded cols
    wk = jnp.transpose(w, (2, 3, 1, 0)).reshape(K, Co)
    wk = jnp.pad(wk, ((0, 0), (0, Cop - Co))).astype(cdt)
    g2 = jnp.pad(gamma, (0, Cop - Co)).reshape(1, Cop).astype(jnp.float32)
    b2 = jnp.pad(beta, (0, Cop - Co)).reshape(1, Cop).astype(jnp.float32)

    # --- spatial tiling over flattened output pixels --------------------------
    tm = min(tile_m, M)
    if tm < M:
        tm = max(8, (tm // 8) * 8)
    nm = pl.cdiv(M, tm)

    kernel = functools.partial(_conv_ln_kernel, inv_channels=1.0 / Co)

    itemsize = jnp.dtype(cdt).itemsize
    out_itemsize = jnp.dtype(x.dtype).itemsize
    cost = pl.CostEstimate(
        flops=int(2 * B * M * K * Co + 8 * B * M * Co),
        transcendentals=int(B * M),
        bytes_accessed=int(B * M * K * itemsize + K * Cop * itemsize
                           + B * M * Cop * out_itemsize + 2 * Cop * 4),
    )

    out_p = pl.pallas_call(
        kernel,
        out_shape=jax.ShapeDtypeStruct((B, M, Cop), x.dtype),
        grid=(B, nm),
        in_specs=[
            pl.BlockSpec((pl.Squeezed(), tm, K), lambda b, m: (b, m, 0)),
            pl.BlockSpec((K, Cop), lambda b, m: (0, 0)),
            pl.BlockSpec((1, Cop), lambda b, m: (0, 0)),
            pl.BlockSpec((1, Cop), lambda b, m: (0, 0)),
        ],
        out_specs=pl.BlockSpec((pl.Squeezed(), tm, Cop), lambda b, m: (b, m, 0)),
        compiler_params=pltpu.CompilerParams(
            dimension_semantics=("parallel", "parallel"),
            # sized against v7x's 64 MiB physical VMEM with headroom; per-step
            # working set at tile_m=512, C=96 f32 is ~8 MiB double-buffered.
            vmem_limit_bytes=48 * 1024 * 1024),
        cost_estimate=cost,
    )(patches, wk, g2, b2)

    # drop lane padding, restore (B, Ho, Wo, 2C)
    return out_p[:, :, :Co].reshape(B, Ho, Wo, Co)


def reference(x, w, gamma, beta):
    """Pure-JAX reference matching the PyTorch module semantics."""
    y = lax.conv_general_dilated(
        x.transpose(0, 3, 1, 2), w, window_strides=(2, 2),
        padding=((1, 1), (1, 1)),
        dimension_numbers=("NCHW", "OIHW", "NCHW")).transpose(0, 2, 3, 1)
    mean = jnp.mean(y, axis=-1, keepdims=True)
    var = jnp.mean((y - mean) ** 2, axis=-1, keepdims=True)
    return (y - mean) * lax.rsqrt(var + LN_EPS) * gamma + beta


if __name__ == "__main__":
    B, H, W, C = 2, 16, 16, 4  # dim = 4 -> output channels 2*dim = 8
    key = jax.random.PRNGKey(0)
    k1, k2, k3, k4 = jax.random.split(key, 4)

    x = jax.random.normal(k1, (B, H, W, C), dtype=jnp.float32)
    conv_w = 0.2 * jax.random.normal(k2, (2 * C, C, 3, 3), dtype=jnp.float32)
    gamma = 1.0 + 0.1 * jax.random.normal(k3, (2 * C,), dtype=jnp.float32)
    beta = 0.1 * jax.random.normal(k4, (2 * C,), dtype=jnp.float32)

    out = jax.block_until_ready(conv_downsampler(x, conv_w, gamma, beta))
    ref = reference(x, conv_w, gamma, beta)

    assert out.shape == (B, H // 2, W // 2, 2 * C), out.shape
    max_err = jnp.max(jnp.abs(out - ref))
    if not bool(max_err < 2e-4):
        raise AssertionError(f"Pallas kernel mismatch, max abs err = {max_err}")
    print("KERNEL_OK")
</pallas_src>

<mosaic_0001>
module attributes {stable_mosaic.version = 11 : i64} {
  func.func @_conv_ln_kernel(%arg0: i32, %arg1: i32, %arg2: memref<1x64x36xf32, #tpu.memory_space<vmem>>, %arg3: memref<36x128xf32, #tpu.memory_space<vmem>>, %arg4: memref<1x128xf32, #tpu.memory_space<vmem>>, %arg5: memref<1x128xf32, #tpu.memory_space<vmem>>, %arg6: memref<1x64x128xf32, #tpu.memory_space<vmem>>) attributes {dimension_semantics = [#tpu.dimension_semantics<parallel>, #tpu.dimension_semantics<parallel>], iteration_bounds = array<i64: 2, 1>, scalar_prefetch = 0 : i64, scratch_operands = 0 : i64, tpu.core_type = #tpu.core_type<tc>, window_params = [{transform_indices = @transform_0, window_bounds = array<i64: 1, 64, 36>}, {pipeline_mode = #tpu.pipeline_mode<synchronous>, transform_indices = @transform_1, window_bounds = array<i64: 36, 128>}, {pipeline_mode = #tpu.pipeline_mode<synchronous>, transform_indices = @transform_2, window_bounds = array<i64: 1, 128>}, {pipeline_mode = #tpu.pipeline_mode<synchronous>, transform_indices = @transform_3, window_bounds = array<i64: 1, 128>}, {transform_indices = @transform_4, window_bounds = array<i64: 1, 64, 128>}]} {
    %c0 = arith.constant 0 : index
    %c0_0 = arith.constant 0 : index
    %c0_1 = arith.constant 0 : index
    %0 = vector.load %arg2[%c0, %c0_0, %c0_1] : memref<1x64x36xf32, #tpu.memory_space<vmem>>, vector<1x64x36xf32>
    %1 = vector.shape_cast %0 : vector<1x64x36xf32> to vector<64x36xf32>
    %c0_2 = arith.constant 0 : index
    %c0_3 = arith.constant 0 : index
    %2 = vector.load %arg3[%c0_2, %c0_3] : memref<36x128xf32, #tpu.memory_space<vmem>>, vector<36x128xf32>
    %cst = arith.constant dense<0.000000e+00> : vector<64x128xf32>
    %3 = tpu.matmul %1, %2, %cst {dimension_numbers = #tpu.dot_dimension_numbers<[1], [0], [0], [1], [0, 0, 1, 1], [], []>} : vector<64x36xf32>, vector<36x128xf32>, vector<64x128xf32> -> vector<64x128xf32>
    %cst_4 = arith.constant dense<0.000000e+00> : vector<64xf32>
    %4 = vector.multi_reduction <add>, %3, %cst_4 [1] : vector<64x128xf32> to vector<64xf32>
    %5 = vector.shape_cast %4 : vector<64xf32> to vector<64x1xf32>
    %6 = arith.mulf %3, %3 : vector<64x128xf32>
    %cst_5 = arith.constant dense<0.000000e+00> : vector<64xf32>
    %7 = vector.multi_reduction <add>, %6, %cst_5 [1] : vector<64x128xf32> to vector<64xf32>
    %8 = vector.shape_cast %7 : vector<64xf32> to vector<64x1xf32>
    %cst_6 = arith.constant 1.250000e-01 : f32
    %9 = vector.broadcast %cst_6 : f32 to vector<64x1xf32>
    %10 = arith.mulf %5, %9 : vector<64x1xf32>
    %cst_7 = arith.constant 1.250000e-01 : f32
    %11 = vector.broadcast %cst_7 : f32 to vector<64x1xf32>
    %12 = arith.mulf %8, %11 : vector<64x1xf32>
    %13 = arith.mulf %10, %10 : vector<64x1xf32>
    %14 = arith.subf %12, %13 : vector<64x1xf32>
    %15 = vector.broadcast %10 : vector<64x1xf32> to vector<64x128xf32>
    %16 = arith.subf %3, %15 : vector<64x128xf32>
    %cst_8 = arith.constant 9.99999974E-6 : f32
    %17 = vector.broadcast %cst_8 : f32 to vector<64x1xf32>
    %18 = arith.addf %14, %17 : vector<64x1xf32>
    %19 = math.rsqrt %18 : vector<64x1xf32>
    %20 = vector.broadcast %19 : vector<64x1xf32> to vector<64x128xf32>
    %21 = arith.mulf %16, %20 : vector<64x128xf32>
    %c0_9 = arith.constant 0 : index
    %c0_10 = arith.constant 0 : index
    %22 = vector.load %arg4[%c0_9, %c0_10] : memref<1x128xf32, #tpu.memory_space<vmem>>, vector<1x128xf32>
    %23 = vector.broadcast %22 : vector<1x128xf32> to vector<64x128xf32>
    %24 = arith.mulf %21, %23 : vector<64x128xf32>
    %c0_11 = arith.constant 0 : index
    %c0_12 = arith.constant 0 : index
    %25 = vector.load %arg5[%c0_11, %c0_12] : memref<1x128xf32, #tpu.memory_space<vmem>>, vector<1x128xf32>
    %26 = vector.broadcast %25 : vector<1x128xf32> to vector<64x128xf32>
    %27 = arith.addf %24, %26 : vector<64x128xf32>
    %c0_13 = arith.constant 0 : index
    %c0_14 = arith.constant 0 : index
    %c0_15 = arith.constant 0 : index
    %28 = vector.load %arg6[%c0_13, %c0_14, %c0_15] : memref<1x64x128xf32, #tpu.memory_space<vmem>>, vector<1x64x128xf32>
    %29 = vector.shape_cast %28 : vector<1x64x128xf32> to vector<64x128xf32>
    %30 = vector.shape_cast %27 : vector<64x128xf32> to vector<1x64x128xf32>
    tpu.vector_store %arg6[%c0_13, %c0_14, %c0_15], %30 {strides = array<i32>} : memref<1x64x128xf32, #tpu.memory_space<vmem>>, vector<1x64x128xf32>,
    return
  }
  func.func @transform_0(%arg0: i32, %arg1: i32) -> (i32, i32, i32) {
    %c0_i32 = arith.constant 0 : i32
    %c0_i32_0 = arith.constant 0 : i32
    return %arg0, %arg1, %c0_i32 : i32, i32, i32
  }
  func.func @transform_1(%arg0: i32, %arg1: i32) -> (i32, i32) {
    %c0_i32 = arith.constant 0 : i32
    %c0_i32_0 = arith.constant 0 : i32
    %c0_i32_1 = arith.constant 0 : i32
    return %c0_i32, %c0_i32_0 : i32, i32
  }
  func.func @transform_2(%arg0: i32, %arg1: i32) -> (i32, i32) {
    %c0_i32 = arith.constant 0 : i32
    %c0_i32_0 = arith.constant 0 : i32
    %c0_i32_1 = arith.constant 0 : i32
    return %c0_i32, %c0_i32_0 : i32, i32
  }
  func.func @transform_3(%arg0: i32, %arg1: i32) -> (i32, i32) {
    %c0_i32 = arith.constant 0 : i32
    %c0_i32_0 = arith.constant 0 : i32
    %c0_i32_1 = arith.constant 0 : i32
    return %c0_i32, %c0_i32_0 : i32, i32
  }
  func.func @transform_4(%arg0: i32, %arg1: i32) -> (i32, i32, i32) {
    %c0_i32 = arith.constant 0 : i32
    %c0_i32_0 = arith.constant 0 : i32
    return %arg0, %arg1, %c0_i32 : i32, i32, i32
  }
}

</mosaic_0001>

<bundles_post_ra>
// kernel: tpu_custom_call.1
= control target key start
LH: loop header
LB: loop body
LE: loop exit
PB: predicated region body
PF: predicated region fallthrough
CT: control target
= control target key end

     0   :  { %9 = vsyncpa [#allocation3], 0  ;;  %s1099_s0 = inlined_call_operand.vmem [shape: f32[2,64,36], index: 0, kind: input, shape index: {}]   ;;  %s1100_s1 = inlined_call_operand.vmem [shape: f32[36,128], index: 1, kind: input, shape index: {}]   ;;  %s1101_s2 = inlined_call_operand.vmem [shape: f32[1,128], index: 2, kind: input, shape index: {}]   ;;  %s1102_s3 = inlined_call_operand.vmem [shape: f32[1,128], index: 3, kind: input, shape index: {}]   ;;  %s1103_s4 = inlined_call_operand.hbm [shape: f32[2,64,128], index: 4, kind: output, shape index: {}]  }
   0x1   :  { %11 = vsyncpa [#allocation3 + $0x1], 0  ;;  %s867_s15 = smov 0   ;;  %s869_s16 = smov 0  }
   0x2   :  { %s871_s17 = smov 0   ;;  %s873_s18 = smov 0  }
   0x3   :  { %s875_s19 = smov 0   ;;  %s877_s20 = smov 0  }
   0x4 LB: > { %s611_s21 = sadd.s32 4294967295, %s837_s20   ;;  %s612_s22 = sadd.s32 4294967294, %s837_s20   ;;  %s837_s20 = sphi %s877_s20, %s17_s20   ;;  %s833_s19 = sphi %s875_s19, %s1110_s19   ;;  %s829_s18 = sphi %s873_s18, %s1109_s18   ;;  %s825_s17 = sphi %s871_s17, %s1108_s17   ;;  %s821_s16 = sphi %s869_s16, %s1107_s16   ;;  %s817_s15 = sphi %s867_s15, %s1106_s15  }
   0x5   : > { %s29_s23 = sadd.s32 1, %s833_s19  ;;  %s129_s24 = sadd.s32 1, %s825_s17 }
   0x6   : > { %p31_p0 = scmp.ge.s32.totalorder %s29_s23, 2  ;;  %p139_p1 = scmp.ne.s32.totalorder %s825_s17, %s821_s16 }
   0x7   : > { %p140_p2 = scmp.eq.s32.totalorder %s611_s21, 1  ;;  %p145_p3 = scmp.ne.s32.totalorder %s821_s16, %s817_s15 }
   0x8   : > { %s1112_s23 = smov (%p31_p0, %s29_s23), 0  ;;  %p146_p5 = scmp.eq.s32.totalorder %s612_s22, 1 }
   0x9   : > { %p907_p4 = por %p140_p2, %p139_p1  ;;  %s124_s26 = ssub.s32 %s833_s19, %s1112_s23 }
   0xa   : > { %p615_p6 = scmp.ge.s32.totalorder %s837_s20, 1  ;;  %p127_p7 = scmp.eq.s32.totalorder %s124_s26, 0 }
   0xb   : > { %p914_p8 = por %p146_p5, %p145_p3  ;;  %p186_p9 = scmp.lt.s32.totalorder %s837_s20, 3 }
   0xc   : > { %s920_s28 = scalar_select %p127_p7, %s825_s17, %s129_s24  }
   0xd   : > { %p187_p10 = pnand %p615_p6, %p186_p9 }
   0xe   : > { %v235_v0 = vld [vmem:[%s1100_s1] sm:$0xff] (!%p187_p10)  ;;  %v236_v1 = vld [vmem:[%s1100_s1 + $0x8] sm:$0xff] (!%p187_p10)  ;;  %v237_v2 = vld [vmem:[%s1100_s1 + $0x10] sm:$0xff] (!%p187_p10)  ;;  %p217_p11 = scmp.lt.s32.totalorder (!%p187_p10), %s829_s18, 1  ;;  %vm240_vm0 = vcmask (!%p187_p10), 293888   ;;  %vm265_vm1 = vcmask (!%p187_p10), 1043456  }
   0xf   : > { %190 = sbr.rel (%p187_p10) target bundleno = 450 (0x1c2), region = 36  ;;  %v672_v3 = vpack.c.bf16 (!%p187_p10), %v236_v1, %v235_v0  ;;  %v238_v4 = vld [vmem:[%s1100_s1 + $0x18] sm:$0xff] (!%p187_p10)  ;;  %v239_v6 = vld [vmem:[%s1100_s1 + $0x20] sm:$0xf] (!%p187_p10)  ;;  %s213_s26 = sand.u32 (!%p187_p10), 1, %s821_s16  }
  0x10   : > { %v676_v5 = vpack.c.bf16 (!%p187_p10), %v238_v4, %v237_v2  ;;  %v999_v0 = vld [vmem:[%s1101_s2] ss:$0 sm:$0xff] (!%p187_p10)  ;;  %s616_s5 = sshll.u32 (!%p187_p10), %s213_s26, 6  ;;  %s636_s9 = sshll.u32 (!%p187_p10), %s829_s18, 10 }
  0x11   : > { %673 = vmatprep.subr.bf16.mxu0 (!%p187_p10), %v672_v3  ;;  %680 = vmatprep.subr.bf16.mxu1 (!%p187_p10), %v672_v3  ;;  %s1011_s8 = scalar_lea.vmem (!%p187_p10), [#allocation2], %s616_s5  ;;  %s1044_s13 = scalar_lea.hbm (!%p187_p10), %s1103_s4, %s636_s9 }
  0x12   : > { %675 = vmatpush3.bf16.msra.mxu0 (!%p187_p10), %v672_v3  ;;  %683 = vmatpush3.bf16.msra.mxu1 (!%p187_p10), %v672_v3  ;;  %s532_s10 = sshll.u32 (!%p187_p10), %s1011_s8, 4  ;;  %s1046_s10 = int_to_ptr.vmem [resolvable:$true] %s532_s10 }
  0x13   : > { %677 = vmatprep.subr.bf16.mxu0 (!%p187_p10), %v676_v5  ;;  %681 = vmatprep.subr.bf16.mxu1 (!%p187_p10), %v676_v5  ;;  %s759_s14 = scalar_lea.vmem (!%p187_p10), %s1046_s10, 1024 }
  0x14   : > { %p760_p12 = scmp.ne.s32.totalorder (!%p187_p10), %s1046_s10, %s759_s14 }
  0x16   : > { %s218_s11 = scalar_select %p217_p11, %s829_s18, 1  ;;  %679 = vmatpush3.bf16.msra.mxu0 %v676_v5  ;;  %684 = vmatpush3.bf16.msra.mxu1 %v676_v5  ;;  %v1006_v5 = vld [vmem:[%s1102_s3] ss:$0 sm:$0xff] }
  0x17   : > { %658 = vmatprep.subr.msk.mxu0 %vm265_vm1, %v239_v6  ;;  %682 = vmatprep.subr.msk.mxu1 %vm265_vm1, %v239_v6  ;;  %s1053_s18 = scalar_lea.sflag [#allocation3], %s213_s26  ;;  %p761_p13 = pnand %p760_p12, %p907_p4 }
  0x18   : > { %s635_s12 = sshll.u32 %s218_s11, 6 }
  0x19   : > { %s224_s21 = scalar_lea.vmem %s1099_s0, %s635_s12  ;;  %p762_p0 = pneg %p761_p13 }
  0x1a   : > { %v227_v7 = vld [vmem:[%s224_s21] sm:$0xff]  ;;  %v228_v9 = vld [vmem:[%s224_s21 + $0x8] sm:$0xff]  ;;  %v229_v11 = vld [vmem:[%s224_s21 + $0x10] sm:$0xff]  ;;  %659 = vmatpush3.msk.msra.mxu0 %vm265_vm1, %v239_v6  ;;  %685 = vmatpush3.msk.msra.mxu1 %vm265_vm1, %v239_v6 }
  0x1b   : > { %v231_v8 = vld [vmem:[%s224_s21 + $0x20] sm:$0xff]  ;;  %660 = vmatprep.mubr.msk.f32.mxu0 %vm240_vm0, %v227_v7  ;;  %v232_v10 = vld [vmem:[%s224_s21 + $0x28] sm:$0xff]  ;;  %v233_v12 = vld [vmem:[%s224_s21 + $0x30] sm:$0xff] }
  0x1c   : > { %666 = vmatprep.mubr.msk.f32.mxu1 %vm240_vm0, %v231_v8  ;;  %661 = vmatmul.mubr.msk.f32.vlgmr.msra.gmra.mrb[0].mxu0 %vm240_vm0, %v228_v9  ;;  %v230_v13 = vld [vmem:[%s224_s21 + $0x18] sm:$0xff] }
  0x1d   : > { %667 = vmatmul.mubr.msk.f32.vlgmr.msra.gmra.mrb[0].mxu1 %vm240_vm0, %v232_v10  ;;  %663 = vmatprep.mubr.msk.f32.mxu0 %vm240_vm0, %v229_v11  ;;  %v234_v14 = vld [vmem:[%s224_s21 + $0x38] sm:$0xff]  ;;  %s839_s21 = smov [#allocation2]  }
  0x1e   : > { %669 = vmatprep.mubr.msk.f32.mxu1 %vm240_vm0, %v233_v12  ;;  %s763_s22 = sshll.u32 %s839_s21, 4  ;;  %s764_s22 = int_to_ptr.vmem [resolvable:$false] %s763_s22 }
  0x1f   : > { %s765_s24 = scalar_lea.vmem %s764_s22, 2048  ;;  %p766_p1 = scmp.lt.s32.totalorder %s1046_s10, %s764_s22 }
  0x20   : > { %664 = vmatmul.mubr.msk.f32.gmra.mrb[2].mxu0 %vm240_vm0, %v230_v13  ;;  %p767_p2 = scmp.lt.s32.totalorder %s765_s24, %s759_s14 }
  0x21   : > { %670 = vmatmul.mubr.msk.f32.gmra.mrb[2].mxu1 %vm240_vm0, %v234_v14 }
  0x22   : > { %p768_p3 = por %p767_p2, %p766_p1 }
  0x24   : > { %p769_p5 = pnand %p768_p3, %p762_p0 }
  0xef   : > { %v950_v15 = vpop.f32.mrb[0].mxu0 }
  0xf0   : > { %v952_v16 = vpop.f32.mrb[0].mxu1  ;;  %376 = vadd.xlane.f32.xlu0 %v950_v15  ;;  %v958_v18 = vpop.f32.mrb[1].mxu0  ;;  %v391_v19 = vmul.f32 %v950_v15, %v950_v15 }
  0xf1   : > { %384 = vadd.xlane.f32.xlu1 %v952_v16  ;;  %v955_v17 = vpop.f32.mrb[1].mxu1  ;;  %v395_v24 = vmul.f32 %v952_v16, %v952_v16  ;;  %v390_v25 = vmul.f32 %v958_v18, %v958_v18 }
  0xf2   : > { %v394_v26 = vmul.f32 %v955_v17, %v955_v17 }
  0xf3   : > { %v962_v20 = vpop.f32.mrb[2].mxu0 }
  0xf4   : > { %v964_v21 = vpop.f32.mrb[2].mxu1  ;;  %374 = vadd.xlane.f32.xlu0 %v958_v18  ;;  %v967_v22 = vpop.f32.mrb[3].mxu0  ;;  %v393_v27 = vmul.f32 %v962_v20, %v962_v20 }
  0xf5   : > { %400 = vadd.xlane.f32.xlu1 %v391_v19  ;;  %v969_v23 = vpop.f32.mrb[3].mxu1  ;;  %v392_v28 = vmul.f32 %v967_v22, %v967_v22  ;;  %v397_v29 = vmul.f32 %v964_v21, %v964_v21 }
  0xf6   : > { %v396_v30 = vmul.f32 %v969_v23, %v969_v23 }
  0xf8   : > { %382 = vadd.xlane.f32.xlu0 %v955_v17 }
  0xf9   : > { %408 = vadd.xlane.f32.xlu1 %v395_v24 }
  0xfc   : > { %398 = vadd.xlane.f32.xlu0 %v390_v25 }
  0xfd   : > { %380 = vadd.xlane.f32.xlu1 %v962_v20 }
 0x100   : > { %406 = vadd.xlane.f32.xlu0 %v394_v26 }
 0x101   : > { %388 = vadd.xlane.f32.xlu1 %v964_v21 }
 0x104   : > { %386 = vadd.xlane.f32.xlu0 %v969_v23 }
 0x105   : > { %378 = vadd.xlane.f32.xlu1 %v967_v22 }
 0x108   : > { %402 = vadd.xlane.f32.xlu0 %v392_v28 }
 0x109   : > { %404 = vadd.xlane.f32.xlu1 %v393_v27 }
 0x10c   : > { %410 = vadd.xlane.f32.xlu0 %v396_v30 }
 0x10d   : > { %412 = vadd.xlane.f32.xlu1 %v397_v29 }
 0x17d   : > { %v377_v32 = vpop.xlane.xlu0 %376 }
 0x17e   : > { %v385_v31 = vpop.xlane.xlu1 %384  ;;  %v415_v33 = vmul.f32 0.125, %v377_v32 }
 0x17f   : > { %v419_v36 = vmul.f32 0.125, %v385_v31 }
 0x180   : > { %v431_v37 = vmul.f32 %v415_v33, %v415_v33  ;;  %v447_v60 = vsub.f32 %v950_v15, %v415_v33 }
 0x181   : > { %v375_v35 = vpop.xlane.xlu0 %374  ;;  %v435_v42 = vmul.f32 %v419_v36, %v419_v36  ;;  %v451_v6 = vsub.f32 %v952_v16, %v419_v36 }
 0x182   : > { %v401_v34 = vpop.xlane.xlu1 %400  ;;  %v414_v44 = vmul.f32 0.125, %v375_v35 }
 0x183   : > { %v423_v38 = vmul.f32 0.125, %v401_v34 }
 0x184   : > { %v430_v49 = vmul.f32 %v414_v44, %v414_v44  ;;  %v446_v16 = vsub.f32 %v958_v18, %v414_v44 }
 0x185   : > { %v439_v39 = vsub.f32 %v423_v38, %v431_v37  ;;  %v383_v41 = vpop.xlane.xlu0 %382 }
 0x186   : > { %v409_v40 = vpop.xlane.xlu1 %408  ;;  %v990_v51 = vmul.f32 0.125, %v383_v41 }
 0x187   : > { %v455_v43 = vadd.f32 1e-05, %v439_v39  ;;  %v427_v45 = vmul.f32 0.125, %v409_v40 }
 0x188   : > { %v434_v56 = vmul.f32 %v990_v51, %v990_v51  ;;  %v450_v18 = vsub.f32 %v955_v17, %v990_v51 }
 0x189   : > { %743 = vrsqrt.f32 %v455_v43  ;;  %v443_v46 = vsub.f32 %v427_v45, %v435_v42  ;;  %v399_v47 = vpop.xlane.xlu0 %398 }
 0x18a   : > { %v381_v48 = vpop.xlane.xlu1 %380  ;;  %v422_v52 = vmul.f32 0.125, %v399_v47 }
 0x18b   : > { %v459_v50 = vadd.f32 1e-05, %v443_v46  ;;  %v417_v1 = vmul.f32 0.125, %v381_v48 }
 0x18c   : > { %v438_v53 = vsub.f32 %v422_v52, %v430_v49 }
 0x18d   : > { %745 = vrsqrt.f32 %v459_v50  ;;  %v407_v54 = vpop.xlane.xlu0 %406  ;;  %v433_v13 = vmul.f32 %v417_v1, %v417_v1  ;;  %v449_v50 = vsub.f32 %v962_v20, %v417_v1 }
 0x18e   : > { %v389_v55 = vpop.xlane.xlu1 %388  ;;  %v454_v57 = vadd.f32 1e-05, %v438_v53  ;;  %v426_v58 = vmul.f32 0.125, %v407_v54 }
 0x18f   : > { %v421_v8 = vmul.f32 0.125, %v389_v55 }
 0x190   : > { %747 = vrsqrt.f32 %v454_v57  ;;  %v442_v59 = vsub.f32 %v426_v58, %v434_v56 }
 0x191   : > { %v387_v61 = vpop.xlane.xlu0 %386  ;;  %v437_v29 = vmul.f32 %v421_v8, %v421_v8  ;;  %v453_v55 = vsub.f32 %v964_v21, %v421_v8 }
 0x192   : > { %v379_v62 = vpop.xlane.xlu1 %378  ;;  %v458_v2 = vadd.f32 1e-05, %v442_v59  ;;  %v420_v9 = vmul.f32 0.125, %v387_v61 }
 0x193   : > { %v744_v63 = vpop.eup %743  ;;  %v416_v3 = vmul.f32 0.125, %v379_v62 }
 0x194   : > { %v471_v4 = vmul.f32 %v744_v63, %v447_v60  ;;  %749 = vrsqrt.f32 %v458_v2  ;;  %v436_v30 = vmul.f32 %v420_v9, %v420_v9  ;;  %v452_v58 = vsub.f32 %v969_v23, %v420_v9 }
 0x195   : > { %v403_v11 = vpop.xlane.xlu0 %402  ;;  %v432_v14 = vmul.f32 %v416_v3, %v416_v3  ;;  %v448_v51 = vsub.f32 %v967_v22, %v416_v3 }
 0x196   : > { %v486_v7 = vmul.f32 %v999_v0, %v471_v4  ;;  %v405_v10 = vpop.xlane.xlu1 %404  ;;  %v424_v19 = vmul.f32 0.125, %v403_v11 }
 0x197   : > { %v746_v12 = vpop.eup %745  ;;  %v425_v15 = vmul.f32 0.125, %v405_v10 }
 0x198   : > { %v501_v24 = vadd.f32 %v1006_v5, %v486_v7  ;;  %v475_v25 = vmul.f32 %v746_v12, %v451_v6  ;;  %v440_v27 = vsub.f32 %v424_v19, %v432_v14 }
 0x199   : > { %v441_v26 = vsub.f32 %v425_v15, %v433_v13  ;;  %v411_v32 = vpop.xlane.xlu0 %410 }
 0x19a   : > { %509 = vst [vmem:[%s1011_s8 + $0x8] sm:$0xff] %v501_v24  ;;  %v490_v28 = vmul.f32 %v999_v0, %v475_v25  ;;  %v413_v31 = vpop.xlane.xlu1 %412  ;;  %v748_v33 = vpop.eup %747  ;;  %v456_v35 = vadd.f32 1e-05, %v440_v27  ;;  %v428_v37 = vmul.f32 0.125, %v411_v32 }
 0x19b   : > { %v457_v34 = vadd.f32 1e-05, %v441_v26  ;;  %v429_v36 = vmul.f32 0.125, %v413_v31  ;;  %v470_v39 = vmul.f32 %v748_v33, %v446_v16 }
 0x19c   : > { %v505_v38 = vadd.f32 %v1006_v5, %v490_v28  ;;  %v444_v41 = vsub.f32 %v428_v37, %v436_v30 }
 0x19d   : > { %751 = vrsqrt.f32 %v457_v34  ;;  %v445_v40 = vsub.f32 %v429_v36, %v437_v29  ;;  %v485_v42 = vmul.f32 %v999_v0, %v470_v39 }
 0x19e   : > { %513 = vst [vmem:[%s1011_s8 + $0x28] sm:$0xff] %v505_v38  ;;  %753 = vrsqrt.f32 %v456_v35  ;;  %v750_v43 = vpop.eup %749  ;;  %v460_v45 = vadd.f32 1e-05, %v444_v41 }
 0x19f   : > { %v461_v44 = vadd.f32 1e-05, %v445_v40  ;;  %v500_v46 = vadd.f32 %v1006_v5, %v485_v42  ;;  %v474_v47 = vmul.f32 %v750_v43, %v450_v18 }
 0x1a1   : > { %755 = vrsqrt.f32 %v461_v44  ;;  %508 = vst [vmem:[%s1011_s8] sm:$0xff] %v500_v46  ;;  %v489_v48 = vmul.f32 %v999_v0, %v474_v47 }
 0x1a2   : > { %757 = vrsqrt.f32 %v460_v45 }
 0x1a3   : > { %v504_v49 = vadd.f32 %v1006_v5, %v489_v48 }
 0x1a5   : > { %512 = vst [vmem:[%s1011_s8 + $0x20] sm:$0xff] %v504_v49 }
 0x1a7   : > { %v752_v17 = vpop.eup %751 }
 0x1a8   : > { %v754_v52 = vpop.eup %753  ;;  %v473_v53 = vmul.f32 %v752_v17, %v449_v50 }
 0x1a9   : > { %v472_v54 = vmul.f32 %v754_v52, %v448_v51 }
 0x1aa   : > { %v488_v56 = vmul.f32 %v999_v0, %v473_v53 }
 0x1ab   : > { %v756_v57 = vpop.eup %755  ;;  %v487_v20 = vmul.f32 %v999_v0, %v472_v54 }
 0x1ac   : > { %v758_v59 = vpop.eup %757  ;;  %v503_v60 = vadd.f32 %v1006_v5, %v488_v56  ;;  %v477_v22 = vmul.f32 %v756_v57, %v453_v55 }
 0x1ad   : > { %v502_v61 = vadd.f32 %v1006_v5, %v487_v20  ;;  %v476_v62 = vmul.f32 %v758_v59, %v452_v58 }
 0x1ae   : > { %511 = vst [vmem:[%s1011_s8 + $0x18] sm:$0xff] %v503_v60  ;;  %v492_v21 = vmul.f32 %v999_v0, %v477_v22 }
 0x1af   : > { %510 = vst [vmem:[%s1011_s8 + $0x10] sm:$0xff] %v502_v61  ;;  %v491_v23 = vmul.f32 %v999_v0, %v476_v62 }
 0x1b0   : > { %v507_v63 = vadd.f32 %v1006_v5, %v492_v21 }
 0x1b1   : > { %v506_v1 = vadd.f32 %v1006_v5, %v491_v23 }
 0x1b2   : > { %515 = vst [vmem:[%s1011_s8 + $0x38] sm:$0xff] %v507_v63 }
 0x1b3   : > { %514 = vst [vmem:[%s1011_s8 + $0x30] sm:$0xff] %v506_v1 }
 0x1b4   : > { %772 = shalt.err (!%p769_p5)
}
 0x1b5   : > { %s773_s26 = scalar_lea.hbm %s1044_s13, 1024  ;;  %s777_s5 = scalar_lea.hbm %s1103_s4, 2048 }
 0x1b6   : > { %p774_p6 = scmp.ne.s32.totalorder %s1044_s13, %s773_s26  ;;  %p778_p10 = scmp.lt.u32.totalorder %s1044_s13, %s1103_s4 }
 0x1b7   : > { %p779_p11 = scmp.lt.u32.totalorder %s777_s5, %s773_s26  ;;  %p781_p13 = scmp.lt.u32.totalorder %s773_s26, %s1044_s13 }
 0x1b8   : > { %p775_p7 = pnand %p774_p6, %p907_p4 }
 0x1b9   : > { %p780_p12 = por %p779_p11, %p778_p10 }
 0x1ba   : > { %p776_p9 = pneg %p775_p7 }
 0x1bb   : > { %p782_p0 = por %p781_p13, %p780_p12 }
 0x1bd   : > { %p783_p1 = pnand %p782_p0, %p776_p9 }
 0x1bf   : > { %786 = shalt.err (!%p783_p1)
}
 0x1c0   : > { %s840_s8 = smov 128   ;;  %s841_s9 = smov 8  }
 0x1c1   : > { %686 = dma.vmem_to_hbm [thread:$0]  (%p907_p4), %s1046_s10, 1024, %s1044_s13, %s1053_s18, %s840_s8, %s840_s8, %s841_s9  }
 0x1c2 PF: > { %p692_p2 = scmp.ge.s32.totalorder %s837_s20, 2  ;;  %s547_s11 = sand.u32 1, %s817_s15  }
 0x1c3   : > { %s548_s12 = scalar_lea.sflag [#allocation3], %s547_s11 }
 0x1c4   : > { %p689_p3 = pnand %p692_p2, %p914_p8 }
 0x1c6   : > { %812 = dma.done.wait (!%p689_p3), %s548_s12, 1024  }
 0x1c7   : > { %814 = vsyncadd (!%p689_p3), %s548_s12, 4294966272  ;;  %s17_s20 = sadd.s32 1, %s837_s20   ;;  %s1106_s15 = smov %s821_s16 }
 0x1c8   : > { %p14_p5 = scmp.ge.s32.totalorder %s17_s20, 4   ;;  %s1107_s16 = smov %s825_s17 }
 0x1c9   : > { %s1108_s17 = smov %s920_s28  ;;  %s1109_s18 = smov %s833_s19 }
 0x1ca   : > { %s1110_s19 = smov %s1112_s23  ;;  %16 = sbr.rel (!%p14_p5) target bundleno = 4 (0x4), region = 71 }
 0x1d1   :  { %553 = vsyncpa [#allocation3], 1 }
 0x1d2   :  { %555 = vsyncpa [#allocation3 + $0x1], 1 }

</bundles_post_ra>
